<compile_context>
chip_gen: v7x
topology: tpu7x:2x2x1
jax: 0.10.0
libtpu: 0.0.40
codegen_flags: <defaults>
</compile_context>

<pallas_src>
import functools

import jax
import jax.numpy as jnp
from jax.experimental import pallas as pl
from jax.experimental.pallas import tpu as pltpu

NB_INPUT = 3
NB_HIDDEN = 30
NB_OUTPUT = NB_INPUT

LANE = 128  # TPU lane width


def _device_kind() -> str:
    try:
        return jax.devices()[0].device_kind.lower()
    except Exception:  # pragma: no cover - defensive
        return ""


_KIND = _device_kind()
_IS_V7X = ("v7" in _KIND) or ("7x" in _KIND)
# bf16 EUP (tanh) exists on v6e / v7x; v5e (and older) stay in f32.
_BF16_TANH_OK = _IS_V7X or ("v6" in _KIND)


def mlp_kernel(xt_ref, w1_ref, b1_ref, w2_ref, b2_ref, w3_ref, b3_ref, o_ref,
               *, tanh_dtype):
    # xt: (NB_INPUT, bt) -- batch on lanes.  Weights in PyTorch (out, in) order.
    xt = xt_ref[...]
    z1 = jnp.dot(w1_ref[...], xt, preferred_element_type=jnp.float32) + b1_ref[...]
    h1 = jnp.tanh(z1.astype(tanh_dtype)).astype(jnp.float32)
    z2 = jnp.dot(w2_ref[...], h1, preferred_element_type=jnp.float32) + b2_ref[...]
    h2 = jnp.tanh(z2.astype(tanh_dtype)).astype(jnp.float32)
    y = jnp.dot(w3_ref[...], h2, preferred_element_type=jnp.float32) + b3_ref[...]
    o_ref[...] = y.astype(o_ref.dtype)


@functools.partial(jax.jit, static_argnames=("bt_max", "bf16_tanh", "split_for_v7x"))
def _net_forward_t_impl(xt, params, *, bt_max, bf16_tanh, split_for_v7x):
    """Feature-major forward. xt: (NB_INPUT, B) f32 -> (NB_OUTPUT, B) f32."""
    B = xt.shape[1]
    w1, b1 = params["w1"], params["b1"]   # (30, 3),  (30, 1)
    w2, b2 = params["w2"], params["b2"]   # (30, 30), (30, 1)
    w3, b3 = params["w3"], params["b3"]   # (3, 30),  (3, 1)

    # --- Batch tiling ---------------------------------------------------
    # Clamp the tile budget to a lane multiple (correctness: block last-dim
    # must be 128-divisible), then balance tiles to avoid over-padding.
    bt_max = max(LANE, (int(bt_max) // LANE) * LANE)
    Bp0 = pl.cdiv(max(B, 1), LANE) * LANE          # batch padded to lane mult.
    num_tiles = pl.cdiv(Bp0, bt_max)
    if split_for_v7x and num_tiles < 2 and Bp0 >= 2 * LANE:
        # Give v7x's two TensorCores something to split.
        num_tiles = 2
    bt = pl.cdiv(pl.cdiv(Bp0, num_tiles), LANE) * LANE
    Bp = bt * num_tiles
    grid = (num_tiles,)

    # Padded columns are zeros on input; after the kernel they hold
    # tanh(bias)-derived garbage -- they MUST be sliced off (done below) and
    # never reduced over.
    xt_p = jnp.pad(xt, ((0, 0), (0, Bp - B)))

    # --- VMEM budget ------------------------------------------------------
    # Rough per-column f32 footprint: double-buffered in/out tiles plus the
    # (30, bt) intermediates; weights are ~8 KiB total.
    vmem_need = 4 * bt * (2 * NB_INPUT + 2 * NB_OUTPUT + 4 * NB_HIDDEN) + (64 << 10)
    vmem_cap = (48 << 20) if split_for_v7x else (100 << 20)  # v7x: 64 MiB phys.
    vmem_limit = int(min(vmem_cap, max(16 << 20, 2 * vmem_need)))

    tanh_dtype = jnp.bfloat16 if bf16_tanh else jnp.float32

    act_spec = lambda rows: pl.BlockSpec((rows, bt), lambda i: (0, i))
    const_spec = lambda shape: pl.BlockSpec(shape, lambda i: (0, 0))

    yt = pl.pallas_call(
        functools.partial(mlp_kernel, tanh_dtype=tanh_dtype),
        out_shape=jax.ShapeDtypeStruct((NB_OUTPUT, Bp), xt.dtype),
        grid=grid,
        in_specs=[
            act_spec(NB_INPUT),
            const_spec(w1.shape), const_spec(b1.shape),
            const_spec(w2.shape), const_spec(b2.shape),
            const_spec(w3.shape), const_spec(b3.shape),
        ],
        out_specs=act_spec(NB_OUTPUT),
        compiler_params=pltpu.CompilerParams(
            dimension_semantics=("parallel",),
            vmem_limit_bytes=vmem_limit,
        ),
    )(xt_p, w1, b1, w2, b2, w3, b3)

    return yt[:, :B]


def net_forward_t(xt, params, *, bt_max=8192, bf16_tanh=None):
    """Transpose-free path: xt is (NB_INPUT, B), returns (NB_OUTPUT, B)."""
    if bf16_tanh is None:
        bf16_tanh = _BF16_TANH_OK
    return _net_forward_t_impl(xt, params, bt_max=int(bt_max),
                               bf16_tanh=bool(bf16_tanh),
                               split_for_v7x=_IS_V7X)


def net_forward(x, params, *, bt_max=8192, bf16_tanh=None):
    """PyTorch-layout forward: x (B, NB_INPUT) -> (B, NB_OUTPUT).

    The two transposes here are wrapper-side HBM passes; callers that can
    keep feature-major (3, B) data should use `net_forward_t` directly.
    """
    yt = net_forward_t(x.T, params, bt_max=bt_max, bf16_tanh=bf16_tanh)
    return yt.T


def init_params(key):
    """nn.Linear-style init: U(-1/sqrt(fan_in), +1/sqrt(fan_in)).

    Weights in PyTorch (out_features, in_features) order; biases as
    (out_features, 1) columns for lane-broadcast in the lane-major kernel.
    """
    def linear(key, fan_in, fan_out):
        kw, kb = jax.random.split(key)
        bound = 1.0 / jnp.sqrt(float(fan_in))
        w = jax.random.uniform(kw, (fan_out, fan_in), jnp.float32, -bound, bound)
        b = jax.random.uniform(kb, (fan_out, 1), jnp.float32, -bound, bound)
        return w, b

    k1, k2, k3 = jax.random.split(key, 3)
    w1, b1 = linear(k1, NB_INPUT, NB_HIDDEN)
    w2, b2 = linear(k2, NB_HIDDEN, NB_HIDDEN)
    w3, b3 = linear(k3, NB_HIDDEN, NB_OUTPUT)
    return {"w1": w1, "b1": b1, "w2": w2, "b2": b2, "w3": w3, "b3": b3}


def net_forward_ref(x, p):
    """Pure-JAX reference in PyTorch convention (y = x @ W^T + b)."""
    h = jnp.tanh(x @ p["w1"].T + p["b1"].T)
    h = jnp.tanh(h @ p["w2"].T + p["b2"].T)
    return h @ p["w3"].T + p["b3"].T


if __name__ == "__main__":
    key = jax.random.PRNGKey(0)
    kx, kx2, kp = jax.random.split(key, 3)

    params = init_params(kp)

    # --- exact-parity check (f32 tanh) on a small PyTorch-layout batch ------
    B = 8
    x = jax.random.normal(kx, (B, NB_INPUT), jnp.float32)
    out_f32 = jax.block_until_ready(net_forward(x, params, bf16_tanh=False))
    ref = net_forward_ref(x, params)
    assert out_f32.shape == (B, NB_OUTPUT), out_f32.shape
    assert jnp.allclose(out_f32, ref, atol=1e-4, rtol=1e-4), "f32 mismatch vs reference"

    # --- default (perf) config: bf16 tanh on v6e/v7x, f32 on v5e ------------
    out = jax.block_until_ready(net_forward(x, params))
    tol = 3e-2 if _BF16_TANH_OK else 1e-4
    assert jnp.allclose(out, ref, atol=tol, rtol=tol), "default-config mismatch vs reference"

    # --- feature-major (transpose-free) path, multi-tile grid ---------------
    B2 = 300
    x2 = jax.random.normal(kx2, (B2, NB_INPUT), jnp.float32)
    xt2 = x2.T                                   # (3, 300), feature-major
    yt2 = jax.block_until_ready(net_forward_t(xt2, params, bt_max=128))
    ref2 = net_forward_ref(x2, params)
    assert yt2.shape == (NB_OUTPUT, B2), yt2.shape
    assert jnp.allclose(yt2.T, ref2, atol=tol, rtol=tol), "multi-tile mismatch vs reference"

    print("KERNEL_OK")
</pallas_src>

<mosaic_0001>
module attributes {stable_mosaic.version = 11 : i64} {
  func.func @mlp_kernel(%arg0: i32, %arg1: memref<3x128xf32, #tpu.memory_space<vmem>>, %arg2: memref<30x3xf32, #tpu.memory_space<vmem>>, %arg3: memref<30x1xf32, #tpu.memory_space<vmem>>, %arg4: memref<30x30xf32, #tpu.memory_space<vmem>>, %arg5: memref<30x1xf32, #tpu.memory_space<vmem>>, %arg6: memref<3x30xf32, #tpu.memory_space<vmem>>, %arg7: memref<3x1xf32, #tpu.memory_space<vmem>>, %arg8: memref<3x128xf32, #tpu.memory_space<vmem>>) attributes {dimension_semantics = [#tpu.dimension_semantics<parallel>], iteration_bounds = array<i64: 1>, scalar_prefetch = 0 : i64, scratch_operands = 0 : i64, tpu.core_type = #tpu.core_type<tc>, window_params = [{transform_indices = @transform_0, window_bounds = array<i64: 3, 128>}, {pipeline_mode = #tpu.pipeline_mode<synchronous>, transform_indices = @transform_1, window_bounds = array<i64: 30, 3>}, {pipeline_mode = #tpu.pipeline_mode<synchronous>, transform_indices = @transform_2, window_bounds = array<i64: 30, 1>}, {pipeline_mode = #tpu.pipeline_mode<synchronous>, transform_indices = @transform_3, window_bounds = array<i64: 30, 30>}, {pipeline_mode = #tpu.pipeline_mode<synchronous>, transform_indices = @transform_4, window_bounds = array<i64: 30, 1>}, {pipeline_mode = #tpu.pipeline_mode<synchronous>, transform_indices = @transform_5, window_bounds = array<i64: 3, 30>}, {pipeline_mode = #tpu.pipeline_mode<synchronous>, transform_indices = @transform_6, window_bounds = array<i64: 3, 1>}, {transform_indices = @transform_7, window_bounds = array<i64: 3, 128>}]} {
    %c0 = arith.constant 0 : index
    %c0_0 = arith.constant 0 : index
    %0 = vector.load %arg1[%c0, %c0_0] : memref<3x128xf32, #tpu.memory_space<vmem>>, vector<3x128xf32>
    %c0_1 = arith.constant 0 : index
    %c0_2 = arith.constant 0 : index
    %1 = vector.load %arg2[%c0_1, %c0_2] : memref<30x3xf32, #tpu.memory_space<vmem>>, vector<30x3xf32>
    %cst = arith.constant dense<0.000000e+00> : vector<30x128xf32>
    %2 = tpu.matmul %1, %0, %cst {dimension_numbers = #tpu.dot_dimension_numbers<[1], [0], [0], [1], [0, 0, 1, 1], [], []>} : vector<30x3xf32>, vector<3x128xf32>, vector<30x128xf32> -> vector<30x128xf32>
    %c0_3 = arith.constant 0 : index
    %c0_4 = arith.constant 0 : index
    %3 = vector.load %arg3[%c0_3, %c0_4] : memref<30x1xf32, #tpu.memory_space<vmem>>, vector<30x1xf32>
    %4 = vector.broadcast %3 : vector<30x1xf32> to vector<30x128xf32>
    %5 = arith.addf %2, %4 : vector<30x128xf32>
    %6 = math.tanh %5 : vector<30x128xf32>
    %c0_5 = arith.constant 0 : index
    %c0_6 = arith.constant 0 : index
    %7 = vector.load %arg4[%c0_5, %c0_6] : memref<30x30xf32, #tpu.memory_space<vmem>>, vector<30x30xf32>
    %cst_7 = arith.constant dense<0.000000e+00> : vector<30x128xf32>
    %8 = tpu.matmul %7, %6, %cst_7 {dimension_numbers = #tpu.dot_dimension_numbers<[1], [0], [0], [1], [0, 0, 1, 1], [], []>} : vector<30x30xf32>, vector<30x128xf32>, vector<30x128xf32> -> vector<30x128xf32>
    %c0_8 = arith.constant 0 : index
    %c0_9 = arith.constant 0 : index
    %9 = vector.load %arg5[%c0_8, %c0_9] : memref<30x1xf32, #tpu.memory_space<vmem>>, vector<30x1xf32>
    %10 = vector.broadcast %9 : vector<30x1xf32> to vector<30x128xf32>
    %11 = arith.addf %8, %10 : vector<30x128xf32>
    %12 = math.tanh %11 : vector<30x128xf32>
    %c0_10 = arith.constant 0 : index
    %c0_11 = arith.constant 0 : index
    %13 = vector.load %arg6[%c0_10, %c0_11] : memref<3x30xf32, #tpu.memory_space<vmem>>, vector<3x30xf32>
    %cst_12 = arith.constant dense<0.000000e+00> : vector<3x128xf32>
    %14 = tpu.matmul %13, %12, %cst_12 {dimension_numbers = #tpu.dot_dimension_numbers<[1], [0], [0], [1], [0, 0, 1, 1], [], []>} : vector<3x30xf32>, vector<30x128xf32>, vector<3x128xf32> -> vector<3x128xf32>
    %c0_13 = arith.constant 0 : index
    %c0_14 = arith.constant 0 : index
    %15 = vector.load %arg7[%c0_13, %c0_14] : memref<3x1xf32, #tpu.memory_space<vmem>>, vector<3x1xf32>
    %16 = vector.broadcast %15 : vector<3x1xf32> to vector<3x128xf32>
    %17 = arith.addf %14, %16 : vector<3x128xf32>
    %c0_15 = arith.constant 0 : index
    %c0_16 = arith.constant 0 : index
    %18 = vector.load %arg8[%c0_15, %c0_16] : memref<3x128xf32, #tpu.memory_space<vmem>>, vector<3x128xf32>
    tpu.vector_store %arg8[%c0_15, %c0_16], %17 {strides = array<i32>} : memref<3x128xf32, #tpu.memory_space<vmem>>, vector<3x128xf32>,
    return
  }
  func.func @transform_0(%arg0: i32) -> (i32, i32) {
    %c0_i32 = arith.constant 0 : i32
    %c0_i32_0 = arith.constant 0 : i32
    return %c0_i32, %arg0 : i32, i32
  }
  func.func @transform_1(%arg0: i32) -> (i32, i32) {
    %c0_i32 = arith.constant 0 : i32
    %c0_i32_0 = arith.constant 0 : i32
    %c0_i32_1 = arith.constant 0 : i32
    return %c0_i32, %c0_i32_0 : i32, i32
  }
  func.func @transform_2(%arg0: i32) -> (i32, i32) {
    %c0_i32 = arith.constant 0 : i32
    %c0_i32_0 = arith.constant 0 : i32
    %c0_i32_1 = arith.constant 0 : i32
    return %c0_i32, %c0_i32_0 : i32, i32
  }
  func.func @transform_3(%arg0: i32) -> (i32, i32) {
    %c0_i32 = arith.constant 0 : i32
    %c0_i32_0 = arith.constant 0 : i32
    %c0_i32_1 = arith.constant 0 : i32
    return %c0_i32, %c0_i32_0 : i32, i32
  }
  func.func @transform_4(%arg0: i32) -> (i32, i32) {
    %c0_i32 = arith.constant 0 : i32
    %c0_i32_0 = arith.constant 0 : i32
    %c0_i32_1 = arith.constant 0 : i32
    return %c0_i32, %c0_i32_0 : i32, i32
  }
  func.func @transform_5(%arg0: i32) -> (i32, i32) {
    %c0_i32 = arith.constant 0 : i32
    %c0_i32_0 = arith.constant 0 : i32
    %c0_i32_1 = arith.constant 0 : i32
    return %c0_i32, %c0_i32_0 : i32, i32
  }
  func.func @transform_6(%arg0: i32) -> (i32, i32) {
    %c0_i32 = arith.constant 0 : i32
    %c0_i32_0 = arith.constant 0 : i32
    %c0_i32_1 = arith.constant 0 : i32
    return %c0_i32, %c0_i32_0 : i32, i32
  }
  func.func @transform_7(%arg0: i32) -> (i32, i32) {
    %c0_i32 = arith.constant 0 : i32
    %c0_i32_0 = arith.constant 0 : i32
    return %c0_i32, %arg0 : i32, i32
  }
}

</mosaic_0001>

<bundles_post_ra>
// kernel: _net_forward_t_impl.1
= control target key start
LH: loop header
LB: loop body
LE: loop exit
PB: predicated region body
PF: predicated region fallthrough
CT: control target
= control target key end

     0   :  { %vm69_vm0 = vcmask 1042432   ;;  %vm56_vm1 = vcmask 23552   ;;  %v522_v5 = vmov 0   ;;  %s656_s0 = inlined_call_operand.vmem [shape: f32[3,128], index: 0, kind: input, shape index: {}]   ;;  %s657_s1 = inlined_call_operand.vmem [shape: f32[30,3], index: 1, kind: input, shape index: {}]   ;;  %s658_s2 = inlined_call_operand.vmem [shape: f32[30,1], index: 2, kind: input, shape index: {}]   ;;  %s659_s3 = inlined_call_operand.vmem [shape: f32[30,30], index: 3, kind: input, shape index: {}]   ;;  %s660_s4 = inlined_call_operand.vmem [shape: f32[30,1], index: 4, kind: input, shape index: {}]   ;;  %s661_s5 = inlined_call_operand.vmem [shape: f32[3,30], index: 5, kind: input, shape index: {}]   ;;  %s662_s6 = inlined_call_operand.vmem [shape: f32[3,1], index: 6, kind: input, shape index: {}]   ;;  %s663_s7 = inlined_call_operand.hbm [shape: f32[3,128], index: 7, kind: output, shape index: {}]  }
   0x1   :  { %v27_v0 = vld [vmem:[%s656_s0] sm:$0x7]  ;;  %v29_v2 = vld [vmem:[%s657_s1 + $0x8] sm:$0xff]  ;;  %v30_v3 = vld [vmem:[%s657_s1 + $0x10] sm:$0xff]  ;;  %480 = vset.pattern.permute.xlu0 %v522_v5  ;;  %481 = vset.pattern.permute.xlu1 %v522_v5 }
   0x2   :  { %v28_v1 = vld [vmem:[%s657_s1] sm:$0xff]  ;;  %424 = vmatprep.subr.msk.mxu0 %vm69_vm0, %v27_v0  ;;  %v34_v6 = vld [vmem:[%s658_s2 + $0x10] sm:$0xff]  ;;  %v31_v7 = vld [vmem:[%s657_s1 + $0x18] sm:$0x3f] }
   0x3   :  { %426 = vmatprep.mubr.msk.f32.mxu0 %vm56_vm1, %v28_v1  ;;  %v32_v4 = vld [vmem:[%s658_s2] sm:$0xff]  ;;  %425 = vmatpush3.msk.msra.mxu0 %vm69_vm0, %v27_v0  ;;  %v33_v8 = vld [vmem:[%s658_s2 + $0x8] sm:$0xff] }
   0x4   :  { %427 = vmatmul.mubr.msk.f32.vlgmr.msra.gmra.mrb[0].mxu0 %vm56_vm1, %v29_v2  ;;  %38 = vperm.xlu0 %480, %v32_v4  }
   0x5   :  { %429 = vmatprep.mubr.msk.f32.mxu0 %vm56_vm1, %v30_v3 }
   0x6   :  { %12 = vsyncpa [#allocation3], 0  ;;  %48 = vperm.xlu1 %481, %v34_v6   ;;  %v35_v9 = vld [vmem:[%s658_s2 + $0x18] sm:$0x3f]  ;;  %v166_v10 = vld [vmem:[%s660_s4] sm:$0xff]  ;;  %vm190_vm2 = vcmask 244736  }
   0x7   :  { %v167_v11 = vld [vmem:[%s660_s4 + $0x8] sm:$0xff]  ;;  %v168_v12 = vld [vmem:[%s660_s4 + $0x10] sm:$0xff]  ;;  %v169_v13 = vld [vmem:[%s660_s4 + $0x18] sm:$0x3f]  ;;  %vm203_vm3 = vcmask 1045504   ;;  %vm523_vm4 = vmmov 1  }
   0x8   :  { %430 = vmatmul.mubr.msk.f32.gmra.mrb[2].mxu0 %vm56_vm1, %v31_v7  ;;  %43 = vperm.xlu0 %480, %v33_v8   ;;  %v297_v14 = vld [vmem:[%s662_s6] sm:$0x7]  ;;  %vm618_vm5 = vmpackc.low %vm203_vm3, %vm523_vm4  ;;  %v163_v35 = vld [vmem:[%s659_s3 + $0x8] sm:$0xff]  ;;  %v524_v38 = vmov 0.0|0.0   ;;  %vm525_vm6 = vmmov 0   ;;  %v526_v39 = vmov 0.0  }
   0x9   :  { %v162_v15 = vld [vmem:[%s659_s3] sm:$0xff]  ;;  %v164_v36 = vld [vmem:[%s659_s3 + $0x10] sm:$0xff]  ;;  %v165_v37 = vld [vmem:[%s659_s3 + $0x18] sm:$0x3f]  ;;  %467 = vmatprep.subr.bf16.mxu0 %v524_v38  ;;  %454 = vmatprep.mubr.msk.f32.mxu0 %vm525_vm6, %v526_v39  ;;  %s527_s10 = smov [#allocation2]  }
   0xa   :  { %53 = vperm.xlu1 %481, %v35_v9   ;;  %440 = vmatprep.mubr.msk.f32.mxu1 %vm190_vm2, %v162_v15  ;;  %v296_v58 = vld [vmem:[%s661_s5] sm:$0x7]  ;;  %s386_s0 = sshll.u32 %s527_s10, 4  ;;  %s387_s0 = int_to_ptr.vmem [resolvable:$true] %s386_s0 }
   0xb   :  { %s498_s11 = scalar_lea.vmem %s387_s0, 64  ;;  %p503_p1 = scmp.lt.s32.totalorder %s387_s0, %s387_s0 }
   0xc   :  { %172 = vperm.xlu0 %480, %v166_v10   ;;  %p499_p0 = scmp.ne.s32.totalorder %s387_s0, %s498_s11  ;;  %p504_p2 = scmp.lt.s32.totalorder %s498_s11, %s498_s11 }
   0xe   :  { %177 = vperm.xlu1 %481, %v167_v11   ;;  %p505_p3 = por %p504_p2, %p503_p1 }
  0x10   :  { %182 = vperm.xlu0 %480, %v168_v12   ;;  %p506_p4 = pnand %p505_p3, %p499_p0 }
  0x12   :  { %187 = vperm.xlu1 %481, %v169_v13  }
  0x14   :  { %300 = vperm.xlu0 %480, %v297_v14  }
  0x83   :  { %v39_v16 = vpop.permute.xlu0 %38 }
  0x85   :  { %v49_v17 = vpop.permute.xlu1 %48 }
  0x87   :  { %v44_v18 = vpop.permute.xlu0 %43 }
  0x89   :  { %v54_v23 = vpop.permute.xlu1 %53 }
  0x8b   :  { %v173_v41 = vpop.permute.xlu0 %172 }
  0x8d   :  { %v178_v40 = vpop.permute.xlu1 %177 }
  0x8f   :  { %v183_v48 = vpop.permute.xlu0 %182 }
  0x91   :  { %v188_v46 = vpop.permute.xlu1 %187 }
  0x93   :  { %v301_v59 = vpop.permute.xlu0 %300 }
  0xd7   :  { %v428_v19 = vpop.f32.mrb[0].mxu0 }
  0xd8   :  { %v145_v20 = vadd.f32 %v428_v19, %v44_v18  ;;  %v139_v21 = vpop.f32.mrb[1].mxu0 }
  0xd9   :  { %v140_v22 = vadd.f32 %v139_v21, %v39_v16 }
  0xda   :  { %482 = vtanh.f32 %v145_v20 }
  0xdb   :  { %484 = vtanh.f32 %v140_v22  ;;  %v431_v24 = vpop.f32.mrb[2].mxu0 }
  0xdc   :  { %v155_v25 = vadd.f32 %v431_v24, %v54_v23  ;;  %v149_v26 = vpop.f32.mrb[3].mxu0 }
  0xdd   :  { %v150_v27 = vadd.f32 %v149_v26, %v49_v17 }
  0xde   :  { %486 = vtanh.f32 %v155_v25 }
  0xdf   :  { %488 = vtanh.f32 %v150_v27 }
  0xe4   :  { %v483_v28 = vpop.eup %482 }
  0xe5   :  { %v485_v29 = vpop.eup %484 }
  0xe6   :  { %v457_v30 = vpack.c.bf16 %v483_v28, %v485_v29 }
  0xe8   :  { %v487_v31 = vpop.eup %486  ;;  %458 = vmatprep.subr.bf16.mxu1 %v457_v30 }
  0xe9   :  { %v489_v32 = vpop.eup %488  ;;  %460 = vmatpush3.bf16.msra.mxu1 %v457_v30 }
  0xea   :  { %v461_v34 = vpack.c.bf16 %v487_v31, %v489_v32 }
  0xec   :  { %463 = vmatprep.subr.msk.bf16.mxu1 %vm618_vm5, %v461_v34 }
  0xed   :  { %466 = vmatpush3.bf16.msk.msra.mxu1 %vm618_vm5, %v461_v34 }
  0xf0   :  { %441 = vmatmul.mubr.msk.f32.vlgmr.msra.gmra.mrb[0].mxu1 %vm190_vm2, %v163_v35 }
  0xf1   :  { %443 = vmatprep.mubr.msk.f32.mxu1 %vm190_vm2, %v164_v36 }
  0xf4   :  { %444 = vmatmul.mubr.msk.f32.gmra.mrb[2].mxu1 %vm190_vm2, %v165_v37 }
 0x1c3   :  { %v442_v42 = vpop.f32.mrb[0].mxu1 }
 0x1c4   :  { %v279_v43 = vadd.f32 %v442_v42, %v178_v40  ;;  %v273_v44 = vpop.f32.mrb[1].mxu1 }
 0x1c5   :  { %v274_v45 = vadd.f32 %v273_v44, %v173_v41 }
 0x1c6   :  { %490 = vtanh.f32 %v279_v43 }
 0x1c7   :  { %492 = vtanh.f32 %v274_v45  ;;  %v445_v47 = vpop.f32.mrb[2].mxu1 }
 0x1c8   :  { %v289_v49 = vadd.f32 %v445_v47, %v188_v46  ;;  %v283_v50 = vpop.f32.mrb[3].mxu1 }
 0x1c9   :  { %v284_v51 = vadd.f32 %v283_v50, %v183_v48 }
 0x1ca   :  { %494 = vtanh.f32 %v289_v49 }
 0x1cb   :  { %496 = vtanh.f32 %v284_v51 }
 0x1d0   :  { %v491_v52 = vpop.eup %490 }
 0x1d1   :  { %v493_v53 = vpop.eup %492 }
 0x1d2   :  { %v468_v54 = vpack.c.bf16 %v491_v52, %v493_v53 }
 0x1d4   :  { %v495_v55 = vpop.eup %494  ;;  %469 = vmatpush3.bf16.msra.mxu0 %v468_v54 }
 0x1d5   :  { %v497_v56 = vpop.eup %496  ;;  %470 = vmatprep.subr.bf16.mxu0 %v524_v38 }
 0x1d6   :  { %v471_v57 = vpack.c.bf16 %v495_v55, %v497_v56 }
 0x1d8   :  { %473 = vmatpush3.bf16.msk.msra.mxu0 %vm618_vm5, %v471_v57 }
 0x1db   :  { %455 = vmatmul.mubr.msk.f32.vlgmr.msra.gmra.mrb[4].mxu0 %vm190_vm2, %v296_v58 }
 0x2ae   :  { %v375_v60 = vpop.f32.mrb[4].mxu0 }
 0x2af   :  { %v376_v61 = vadd.f32 %v375_v60, %v301_v59  ;;  %v456_v62 = vpop.f32.mrb[5].mxu0 }
 0x2b1   :  { %379 = vst [vmem:[#allocation2] sm:$0x7] %v376_v61 }
 0x2b2   :  { %509 = shalt.err (!%p506_p4)
}
 0x2b3   :  { %s510_s5 = scalar_lea.hbm %s663_s7, 64 }
 0x2b4   :  { %p511_p5 = scmp.ne.s32.totalorder %s663_s7, %s510_s5  ;;  %p514_p6 = scmp.lt.u32.totalorder %s510_s5, %s663_s7 }
 0x2b6   :  { %p516_p7 = pnand %p514_p6, %p511_p5 }
 0x2b8   :  { %519 = shalt.err (!%p516_p7)
}
 0x2b9   :  { %389 = dma.vmem_to_hbm [thread:$0]  %s387_s0, 64, %s663_s7, [#allocation3]  }
 0x2ba   :  { %520 = dma.done.wait [#allocation3], 64  }
 0x2bb   :  { %521 = vsyncadd [#allocation3], 4294967232 }
 0x2bc   :  { %393 = vsyncpa [#allocation3], 1 }

</bundles_post_ra>
